<compile_context>
chip_gen: v7x
topology: tpu7x:2x2x1
jax: 0.10.0
libtpu: 0.0.40
codegen_flags: <defaults>
</compile_context>

<pallas_src>
import functools

import jax
import jax.numpy as jnp
from jax.experimental import pallas as pl
from jax.experimental.pallas import tpu as pltpu

EPS = 1e-5          # nn.BatchNorm1d default eps
NEG_SLOPE = 0.2     # LeakyReLU negative_slope


def _round_up(v, m):
    return (v + m - 1) // m * m


def _veri2d_kernel(block_layout, final_layout, matmul_dtype,
                   x_ref, w_ref, bn_ref, out_ref):
    """block_layout: ((w_off, c_in, c_out, gb_off), ...); final_layout: (f_off, c_last).

    w_ref : packed matmul-dtype weight slab (one 16-row-aligned slab per block).
    bn_ref: packed f32 slab with [gamma; beta] rows per block, plus the final
            weight row and the final bias (all slices below are static views).
    """
    h_mm = x_ref[...]                                  # already matmul_dtype
    h = h_mm.astype(jnp.float32)

    for (w_off, c_in, c_out, gb_off) in block_layout:
        w = w_ref[w_off:w_off + c_in, :c_out]          # (c_in, c_out), matmul_dtype
        gb = bn_ref[gb_off:gb_off + 2, :c_out]         # rows: [gamma; beta], f32
        gamma = gb[0:1, :]
        beta = gb[1:2, :]

        # Linear (bias=False) on the MXU; bf16 operands, f32 accumulation.
        h = jnp.dot(h_mm, w, preferred_element_type=jnp.float32)

        # BatchNorm1d (training mode, biased batch variance): one pass over h,
        # then a single fused scale/shift FMA.  Stats stay in f32.
        inv_n = 1.0 / h.shape[0]
        sum_h = jnp.sum(h, axis=0, keepdims=True)
        sum_h2 = jnp.sum(h * h, axis=0, keepdims=True)
        mean = sum_h * inv_n
        var = jnp.maximum(sum_h2 * inv_n - mean * mean, 0.0)   # cancellation guard
        scale = gamma * jax.lax.rsqrt(var + EPS)
        shift = beta - mean * scale
        h = h * scale + shift

        # LeakyReLU(0.2): max(h, slope*h) is exact for 0 < slope < 1.
        h = jnp.maximum(h, NEG_SLOPE * h)

        h_mm = h.astype(matmul_dtype)                  # operand for the next MXU push

    # Final Linear(c_last, 1) + bias + Sigmoid.  With 1 output column the MXU
    # would be <1% utilized, so do it on the VPU (broadcast mul) + lane reduce,
    # keeping full f32 precision for the last projection.
    f_off, c_last = final_layout
    w_row = bn_ref[f_off:f_off + 1, :c_last]           # (1, c_last) f32
    bias = bn_ref[f_off + 1:f_off + 2, 0:1]            # (1, 1) f32
    y = jnp.sum(h * w_row, axis=-1, keepdims=True) + bias
    out_ref[...] = jax.nn.sigmoid(y).astype(out_ref.dtype)


def _pack_params(block_params, final_w, final_b, matmul_dtype):
    """Pack params into two lane-dense (128-wide) slabs:
         w_packed  (matmul_dtype): block weights, one 16-row-aligned slab each.
         bn_packed (f32)         : [gamma; beta] per block (8-row slabs), then
                                   final weight row + final bias row (8-row slab).
    Returns (w_packed, bn_packed, block_layout, final_layout) with static offsets."""
    c_last = int(final_w.shape[0])
    c_max = max([int(w.shape[1]) for (w, _, _) in block_params] + [c_last])
    c_max = _round_up(c_max, 128)                      # full-lane, unmasked DMA rows
    w_align = 16 if matmul_dtype != jnp.float32 else 8 # sublane packing of the dtype

    w_row = 0
    bn_row = 0
    block_layout = []
    for (w, _, _) in block_params:
        c_in, c_out = int(w.shape[0]), int(w.shape[1])
        block_layout.append((w_row, c_in, c_out, bn_row))
        w_row += _round_up(c_in, w_align)
        bn_row += 8                                    # gamma+beta use 2 rows, slab padded
    f_off = bn_row
    bn_row += 8                                        # final weight row + bias row

    w_packed = jnp.zeros((w_row, c_max), matmul_dtype)
    bn_packed = jnp.zeros((bn_row, c_max), jnp.float32)
    for (w, g, b), (w_off, c_in, c_out, gb_off) in zip(block_params, block_layout):
        w_packed = w_packed.at[w_off:w_off + c_in, :c_out].set(w.astype(matmul_dtype))
        bn_packed = bn_packed.at[gb_off, :c_out].set(
            jnp.reshape(g, (-1,)).astype(jnp.float32))
        bn_packed = bn_packed.at[gb_off + 1, :c_out].set(
            jnp.reshape(b, (-1,)).astype(jnp.float32))
    bn_packed = bn_packed.at[f_off, :c_last].set(
        jnp.reshape(final_w, (-1,)).astype(jnp.float32))
    bn_packed = bn_packed.at[f_off + 1, 0].set(
        jnp.reshape(jnp.asarray(final_b, jnp.float32), (-1,))[0])
    return w_packed, bn_packed, tuple(block_layout), (f_off, c_last)


def veri2d_forward(x, block_params, final_w, final_b, matmul_dtype=jnp.bfloat16):
    """x: (N, C). block_params: list of (W (Cin,Cout), gamma (1,Cout), beta (1,Cout)).

    matmul_dtype defaults to bf16: every TPU MXU (v5e/v6e/v7x) is bf16-native;
    f32 operands would force a multi-pass decomposition.  Pass jnp.float32 only
    if the extra operand precision is actually required."""
    w_packed, bn_packed, block_layout, final_layout = _pack_params(
        block_params, final_w, final_b, matmul_dtype)
    x_mm = x.astype(matmul_dtype)

    n = int(x.shape[0])

    # Advisory cost estimate so XLA can schedule the surrounding graph sensibly.
    flops = 0
    trans = 0
    c = int(x.shape[1])
    for (w, _, _) in block_params:
        c_out = int(w.shape[1])
        flops += 2 * n * c * c_out + 8 * n * c_out     # matmul + BN/LeakyReLU epilogue
        trans += c_out                                 # rsqrt per channel
        c = c_out
    flops += 2 * n * c                                 # final VPU projection
    trans += n                                         # sigmoid
    bytes_accessed = (x_mm.size * x_mm.dtype.itemsize
                      + w_packed.size * w_packed.dtype.itemsize
                      + bn_packed.size * 4 + n * 4)

    kernel = functools.partial(_veri2d_kernel, block_layout, final_layout, matmul_dtype)

    return pl.pallas_call(
        kernel,
        out_shape=jax.ShapeDtypeStruct((n, 1), jnp.float32),
        in_specs=[
            pl.BlockSpec(memory_space=pltpu.MemorySpace.VMEM),   # x (matmul_dtype)
            pl.BlockSpec(memory_space=pltpu.MemorySpace.VMEM),   # packed weights
            pl.BlockSpec(memory_space=pltpu.MemorySpace.VMEM),   # packed BN params + final w/b
        ],
        out_specs=pl.BlockSpec(memory_space=pltpu.MemorySpace.VMEM),
        cost_estimate=pl.CostEstimate(flops=int(flops),
                                      transcendentals=int(trans),
                                      bytes_accessed=int(bytes_accessed)),
    )(x_mm, w_packed, bn_packed)


def veri2d_reference(x, block_params, final_w, final_b):
    """Pure-JAX reference matching the PyTorch module's training-mode forward."""
    h = x.astype(jnp.float32)
    for (w, g, b) in block_params:
        h = h @ w
        mean = jnp.mean(h, axis=0, keepdims=True)
        var = jnp.mean((h - mean) ** 2, axis=0, keepdims=True)
        h = (h - mean) / jnp.sqrt(var + EPS)
        h = h * g + b
        h = jnp.where(h >= 0.0, h, NEG_SLOPE * h)
    y = h @ final_w + final_b
    return jax.nn.sigmoid(y)


def init_params(key, in_channels, fully_connected_blocks):
    """Deterministic init mimicking PyTorch defaults (Linear: U(-1/sqrt(fan_in), ...),
    BatchNorm1d: gamma=1, beta=0)."""
    block_params = []
    c = in_channels
    for new_c in fully_connected_blocks:
        key, kw = jax.random.split(key)
        bound = 1.0 / jnp.sqrt(jnp.float32(c))
        w = jax.random.uniform(kw, (c, new_c), jnp.float32, -bound, bound)
        gamma = jnp.ones((1, new_c), jnp.float32)
        beta = jnp.zeros((1, new_c), jnp.float32)
        block_params.append((w, gamma, beta))
        c = new_c
    key, kw, kb = jax.random.split(key, 3)
    bound = 1.0 / jnp.sqrt(jnp.float32(c))
    final_w = jax.random.uniform(kw, (c, 1), jnp.float32, -bound, bound)
    final_b = jax.random.uniform(kb, (1, 1), jnp.float32, -bound, bound)
    return block_params, final_w, final_b


if __name__ == "__main__":
    key = jax.random.PRNGKey(0)
    N, C_IN = 8, 32
    FC_BLOCKS = (64, 32)

    key, kx = jax.random.split(key)
    x = jax.random.normal(kx, (N, C_IN), jnp.float32)

    block_params, final_w, final_b = init_params(key, C_IN, FC_BLOCKS)

    out = veri2d_forward(x, block_params, final_w, final_b)
    out = jax.block_until_ready(out)

    ref = veri2d_reference(x, block_params, final_w, final_b)

    assert out.shape == (N, 1)
    assert bool(jnp.all((out >= 0.0) & (out <= 1.0)))
    # Loose tolerance covers the bf16 MXU-operand path (weights/activations in bf16,
    # f32 accumulation, BN stats and final projection in f32).
    assert bool(jnp.allclose(out, ref, atol=5e-2, rtol=5e-2))
    print("KERNEL_OK")
</pallas_src>

<mosaic_0001>
module attributes {stable_mosaic.version = 11 : i64} {
  func.func @_veri2d_kernel(%arg0: memref<8x32xbf16, #tpu.memory_space<vmem>>, %arg1: memref<96x128xbf16, #tpu.memory_space<vmem>>, %arg2: memref<24x128xf32, #tpu.memory_space<vmem>>, %arg3: memref<8x1xf32, #tpu.memory_space<vmem>>) attributes {dimension_semantics = [], scalar_prefetch = 0 : i64, scratch_operands = 0 : i64, tpu.core_type = #tpu.core_type<tc>} {
    %c0 = arith.constant 0 : index
    %c0_0 = arith.constant 0 : index
    %0 = vector.load %arg0[%c0, %c0_0] : memref<8x32xbf16, #tpu.memory_space<vmem>>, vector<8x32xbf16>
    %c0_1 = arith.constant 0 : index
    %c0_2 = arith.constant 0 : index
    %1 = vector.load %arg1[%c0_1, %c0_2] : memref<96x128xbf16, #tpu.memory_space<vmem>>, vector<32x64xbf16>
    %c0_3 = arith.constant 0 : index
    %c0_4 = arith.constant 0 : index
    %2 = vector.load %arg2[%c0_3, %c0_4] : memref<24x128xf32, #tpu.memory_space<vmem>>, vector<2x64xf32>
    %3 = vector.extract_strided_slice %2 {offsets = [0, 0], sizes = [1, 64], strides = [1, 1]} : vector<2x64xf32> to vector<1x64xf32>
    %4 = vector.extract_strided_slice %2 {offsets = [1, 0], sizes = [1, 64], strides = [1, 1]} : vector<2x64xf32> to vector<1x64xf32>
    %cst = arith.constant dense<0.000000e+00> : vector<8x64xf32>
    %5 = tpu.matmul %0, %1, %cst {dimension_numbers = #tpu.dot_dimension_numbers<[1], [0], [0], [1], [0, 0, 1, 1], [], []>} : vector<8x32xbf16>, vector<32x64xbf16>, vector<8x64xf32> -> vector<8x64xf32>
    %cst_5 = arith.constant dense<0.000000e+00> : vector<64xf32>
    %6 = vector.multi_reduction <add>, %5, %cst_5 [0] : vector<8x64xf32> to vector<64xf32>
    %7 = vector.shape_cast %6 : vector<64xf32> to vector<1x64xf32>
    %8 = arith.mulf %5, %5 : vector<8x64xf32>
    %cst_6 = arith.constant dense<0.000000e+00> : vector<64xf32>
    %9 = vector.multi_reduction <add>, %8, %cst_6 [0] : vector<8x64xf32> to vector<64xf32>
    %10 = vector.shape_cast %9 : vector<64xf32> to vector<1x64xf32>
    %cst_7 = arith.constant 1.250000e-01 : f32
    %11 = vector.broadcast %cst_7 : f32 to vector<1x64xf32>
    %12 = arith.mulf %7, %11 : vector<1x64xf32>
    %cst_8 = arith.constant 1.250000e-01 : f32
    %13 = vector.broadcast %cst_8 : f32 to vector<1x64xf32>
    %14 = arith.mulf %10, %13 : vector<1x64xf32>
    %15 = arith.mulf %12, %12 : vector<1x64xf32>
    %16 = arith.subf %14, %15 : vector<1x64xf32>
    %cst_9 = arith.constant 0.000000e+00 : f32
    %17 = vector.broadcast %cst_9 : f32 to vector<1x64xf32>
    %18 = arith.maximumf %16, %17 : vector<1x64xf32>
    %cst_10 = arith.constant 9.99999974E-6 : f32
    %19 = vector.broadcast %cst_10 : f32 to vector<1x64xf32>
    %20 = arith.addf %18, %19 : vector<1x64xf32>
    %21 = math.rsqrt %20 : vector<1x64xf32>
    %22 = arith.mulf %3, %21 : vector<1x64xf32>
    %23 = arith.mulf %12, %22 : vector<1x64xf32>
    %24 = arith.subf %4, %23 : vector<1x64xf32>
    %25 = vector.broadcast %22 : vector<1x64xf32> to vector<8x64xf32>
    %26 = arith.mulf %5, %25 : vector<8x64xf32>
    %27 = vector.broadcast %24 : vector<1x64xf32> to vector<8x64xf32>
    %28 = arith.addf %26, %27 : vector<8x64xf32>
    %cst_11 = arith.constant 2.000000e-01 : f32
    %29 = vector.broadcast %cst_11 : f32 to vector<8x64xf32>
    %30 = arith.mulf %29, %28 : vector<8x64xf32>
    %31 = arith.maximumf %28, %30 : vector<8x64xf32>
    %32 = arith.truncf %31 : vector<8x64xf32> to vector<8x64xbf16>
    %c32 = arith.constant 32 : index
    %c0_12 = arith.constant 0 : index
    %33 = vector.load %arg1[%c32, %c0_12] : memref<96x128xbf16, #tpu.memory_space<vmem>>, vector<64x32xbf16>
    %c8 = arith.constant 8 : index
    %c0_13 = arith.constant 0 : index
    %34 = vector.load %arg2[%c8, %c0_13] : memref<24x128xf32, #tpu.memory_space<vmem>>, vector<2x32xf32>
    %35 = vector.extract_strided_slice %34 {offsets = [0, 0], sizes = [1, 32], strides = [1, 1]} : vector<2x32xf32> to vector<1x32xf32>
    %36 = vector.extract_strided_slice %34 {offsets = [1, 0], sizes = [1, 32], strides = [1, 1]} : vector<2x32xf32> to vector<1x32xf32>
    %cst_14 = arith.constant dense<0.000000e+00> : vector<8x32xf32>
    %37 = tpu.matmul %32, %33, %cst_14 {dimension_numbers = #tpu.dot_dimension_numbers<[1], [0], [0], [1], [0, 0, 1, 1], [], []>} : vector<8x64xbf16>, vector<64x32xbf16>, vector<8x32xf32> -> vector<8x32xf32>
    %cst_15 = arith.constant dense<0.000000e+00> : vector<32xf32>
    %38 = vector.multi_reduction <add>, %37, %cst_15 [0] : vector<8x32xf32> to vector<32xf32>
    %39 = vector.shape_cast %38 : vector<32xf32> to vector<1x32xf32>
    %40 = arith.mulf %37, %37 : vector<8x32xf32>
    %cst_16 = arith.constant dense<0.000000e+00> : vector<32xf32>
    %41 = vector.multi_reduction <add>, %40, %cst_16 [0] : vector<8x32xf32> to vector<32xf32>
    %42 = vector.shape_cast %41 : vector<32xf32> to vector<1x32xf32>
    %cst_17 = arith.constant 1.250000e-01 : f32
    %43 = vector.broadcast %cst_17 : f32 to vector<1x32xf32>
    %44 = arith.mulf %39, %43 : vector<1x32xf32>
    %cst_18 = arith.constant 1.250000e-01 : f32
    %45 = vector.broadcast %cst_18 : f32 to vector<1x32xf32>
    %46 = arith.mulf %42, %45 : vector<1x32xf32>
    %47 = arith.mulf %44, %44 : vector<1x32xf32>
    %48 = arith.subf %46, %47 : vector<1x32xf32>
    %cst_19 = arith.constant 0.000000e+00 : f32
    %49 = vector.broadcast %cst_19 : f32 to vector<1x32xf32>
    %50 = arith.maximumf %48, %49 : vector<1x32xf32>
    %cst_20 = arith.constant 9.99999974E-6 : f32
    %51 = vector.broadcast %cst_20 : f32 to vector<1x32xf32>
    %52 = arith.addf %50, %51 : vector<1x32xf32>
    %53 = math.rsqrt %52 : vector<1x32xf32>
    %54 = arith.mulf %35, %53 : vector<1x32xf32>
    %55 = arith.mulf %44, %54 : vector<1x32xf32>
    %56 = arith.subf %36, %55 : vector<1x32xf32>
    %57 = vector.broadcast %54 : vector<1x32xf32> to vector<8x32xf32>
    %58 = arith.mulf %37, %57 : vector<8x32xf32>
    %59 = vector.broadcast %56 : vector<1x32xf32> to vector<8x32xf32>
    %60 = arith.addf %58, %59 : vector<8x32xf32>
    %cst_21 = arith.constant 2.000000e-01 : f32
    %61 = vector.broadcast %cst_21 : f32 to vector<8x32xf32>
    %62 = arith.mulf %61, %60 : vector<8x32xf32>
    %63 = arith.maximumf %60, %62 : vector<8x32xf32>
    %c16 = arith.constant 16 : index
    %c0_22 = arith.constant 0 : index
    %64 = vector.load %arg2[%c16, %c0_22] : memref<24x128xf32, #tpu.memory_space<vmem>>, vector<1x32xf32>
    %c17 = arith.constant 17 : index
    %c0_23 = arith.constant 0 : index
    %65 = vector.load %arg2[%c17, %c0_23] : memref<24x128xf32, #tpu.memory_space<vmem>>, vector<1x1xf32>
    %66 = vector.broadcast %64 : vector<1x32xf32> to vector<8x32xf32>
    %67 = arith.mulf %63, %66 : vector<8x32xf32>
    %cst_24 = arith.constant dense<0.000000e+00> : vector<8xf32>
    %68 = vector.multi_reduction <add>, %67, %cst_24 [1] : vector<8x32xf32> to vector<8xf32>
    %69 = vector.shape_cast %68 : vector<8xf32> to vector<8x1xf32>
    %70 = vector.broadcast %65 : vector<1x1xf32> to vector<8x1xf32>
    %71 = arith.addf %69, %70 : vector<8x1xf32>
    %72 = arith.negf %71 : vector<8x1xf32>
    %73 = math.exp %72 : vector<8x1xf32>
    %cst_25 = arith.constant 1.000000e+00 : f32
    %74 = vector.broadcast %cst_25 : f32 to vector<8x1xf32>
    %75 = arith.addf %74, %73 : vector<8x1xf32>
    %76 = arith.divf %74, %75 : vector<8x1xf32>
    %c0_26 = arith.constant 0 : index
    %c0_27 = arith.constant 0 : index
    %77 = vector.load %arg3[%c0_26, %c0_27] : memref<8x1xf32, #tpu.memory_space<vmem>>, vector<8x1xf32>
    tpu.vector_store %arg3[%c0_26, %c0_27], %76 {strides = array<i32>} : memref<8x1xf32, #tpu.memory_space<vmem>>, vector<8x1xf32>,
    return
  }
}

</mosaic_0001>

<bundles_post_ra>
// kernel: tpu_custom_call.1
= control target key start
LH: loop header
LB: loop body
LE: loop exit
PB: predicated region body
PF: predicated region fallthrough
CT: control target
= control target key end

     0   :  { %8 = vsyncpa [#allocation3], 0  ;;  %s510_s0 = inlined_call_operand.hbm [shape: bf16[8,32], index: 0, kind: input, shape index: {}]   ;;  %s511_s1 = inlined_call_operand.hbm [shape: bf16[96,128], index: 1, kind: input, shape index: {}]   ;;  %s512_s2 = inlined_call_operand.hbm [shape: f32[24,128], index: 2, kind: input, shape index: {}]   ;;  %s513_s3 = inlined_call_operand.vmem [shape: f32[8,1], index: 3, kind: output, shape index: {}]  }
   0x1   :  { %9 = vsyncpa [#allocation5], 0  ;;  %s435_s12 = smov [#allocation4]   ;;  %s365_s16 = scalar_lea.hbm %s511_s1, 768 }
   0x2   :  { %s25_s13 = sshll.u32 %s435_s12, 4  ;;  %p366_p0 = scmp.ne.s32.totalorder %s511_s1, %s365_s16  ;;  %s26_s13 = int_to_ptr.vmem [resolvable:$true] %s25_s13 }
   0x3   :  { %p369_p1 = scmp.lt.u32.totalorder %s365_s16, %s511_s1 }
   0x5   :  { %p371_p2 = pnand %p369_p1, %p366_p0 }
   0x7   :  { %374 = shalt.err (!%p371_p2)
}
   0x8   :  { %s375_s21 = scalar_lea.vmem %s26_s13, 768  ;;  %p380_p4 = scmp.lt.s32.totalorder %s26_s13, %s26_s13 }
   0x9   :  { %p376_p3 = scmp.ne.s32.totalorder %s26_s13, %s375_s21  ;;  %p381_p5 = scmp.lt.s32.totalorder %s375_s21, %s375_s21 }
   0xb   :  { %p382_p6 = por %p381_p5, %p380_p4 }
   0xd   :  { %p383_p7 = pnand %p382_p6, %p376_p3 }
   0xf   :  { %386 = shalt.err (!%p383_p7)
}
  0x10   :  { %s436_s22 = smov 64   ;;  %s437_s23 = smov 4  }
  0x11   :  { %31 = dma.hbm_to_vmem [thread:$0]  %s511_s1, 768, %s26_s13, [#allocation5], %s436_s22, %s436_s22, %s437_s23  }
  0x12   :  { %s438_s26 = smov [#allocation2]   ;;  %s439_s28 = smov [#allocation6]  }
  0x13   :  { %s16_s27 = sshll.u32 %s438_s26, 4  ;;  %s37_s29 = sshll.u32 %s439_s28, 4  ;;  %s17_s27 = int_to_ptr.vmem [resolvable:$true] %s16_s27  ;;  %s38_s29 = int_to_ptr.vmem [resolvable:$true] %s37_s29 }
  0x14   :  { %s387_s5 = scalar_lea.hbm %s510_s0, 64 }
  0x15   :  { %p388_p8 = scmp.ne.s32.totalorder %s510_s0, %s387_s5  ;;  %p391_p9 = scmp.lt.u32.totalorder %s387_s5, %s510_s0 }
  0x17   :  { %p393_p10 = pnand %p391_p9, %p388_p8 }
  0x19   :  { %396 = shalt.err (!%p393_p10)
}
  0x1a   :  { %s397_s1 = scalar_lea.vmem %s17_s27, 64  ;;  %p402_p12 = scmp.lt.s32.totalorder %s17_s27, %s17_s27 }
  0x1b   :  { %p398_p11 = scmp.ne.s32.totalorder %s17_s27, %s397_s1  ;;  %p403_p13 = scmp.lt.s32.totalorder %s397_s1, %s397_s1 }
  0x1d   :  { %p404_p0 = por %p403_p13, %p402_p12 }
  0x1f   :  { %p405_p1 = pnand %p404_p0, %p398_p11 }
  0x21   :  { %408 = shalt.err (!%p405_p1)
}
  0x22   :  { %19 = dma.hbm_to_vmem [thread:$0]  %s510_s0, 64, %s17_s27, [#allocation3]  }
  0x23   :  { %s409_s14 = scalar_lea.hbm %s512_s2, 384 }
  0x24   :  { %p410_p2 = scmp.ne.s32.totalorder %s512_s2, %s409_s14  ;;  %p413_p3 = scmp.lt.u32.totalorder %s409_s14, %s512_s2 }
  0x26   :  { %p415_p4 = pnand %p413_p3, %p410_p2 }
  0x28   :  { %418 = shalt.err (!%p415_p4)
}
  0x29   :  { %s419_s19 = scalar_lea.vmem %s38_s29, 384  ;;  %p424_p6 = scmp.lt.s32.totalorder %s38_s29, %s38_s29 }
  0x2a   :  { %p420_p5 = scmp.ne.s32.totalorder %s38_s29, %s419_s19  ;;  %p425_p7 = scmp.lt.s32.totalorder %s419_s19, %s419_s19 }
  0x2c   :  { %p426_p8 = por %p425_p7, %p424_p6 }
  0x2e   :  { %p427_p9 = pnand %p426_p8, %p420_p5 }
  0x30   :  { %430 = shalt.err (!%p427_p9)
}
  0x31   :  { %s440_s0 = smov 128   ;;  %s441_s20 = smov 8  }
  0x32   :  { %43 = dma.hbm_to_vmem [thread:$0]  %s512_s2, 384, %s38_s29, [#allocation5], %s440_s0, %s440_s0, %s441_s20  }
  0x33   :  { %431 = dma.done.wait [#allocation3], 64  }
  0x34   :  { %432 = vsyncadd [#allocation3], 4294967232 }
  0x35   :  { %433 = dma.done.wait [#allocation5], 1152  }
  0x36   :  { %434 = vsyncadd [#allocation5], 4294966144  ;;  %v442_v0 = vmov 0.0   ;;  %vm443_vm0 = vmmov 0   ;;  %v351_v1 = vld [vmem:[#allocation4] sm:$0xff]   ;;  %v352_v2 = vld [vmem:[#allocation4 + $0x8] sm:$0xff]   ;;  %v145_v33 = vlaneseq }
  0x37   :  { %322 = vmatprep.subr.bf16.mxu0 %v442_v0  ;;  %326 = vmatprep.mubr.msk.bf16.mxu0 %vm443_vm0, %v442_v0  ;;  %v54_v3 = vld [vmem:[#allocation2] sm:$0xf]  ;;  %vm72_vm1 = vcmask 261120   ;;  %v353_v4 = vld [vmem:[#allocation4 + $0x10] sm:$0xff]   ;;  %v355_v6 = vld [vmem:[#allocation4 + $0x20] sm:$0xff]   ;;  %vm116_vm2 = vcmask 523264  }
  0x38   :  { %330 = vmatprep.subr.bf16.mxu1 %v442_v0  ;;  %338 = vmatprep.mubr.msk.bf16.mxu1 %vm443_vm0, %v442_v0  ;;  %v354_v5 = vld [vmem:[#allocation4 + $0x18] sm:$0xff]   ;;  %v356_v7 = vld [vmem:[#allocation4 + $0x28] sm:$0xff]   ;;  %v146_v34 = vshrl.u32 %v145_v33, 7  ;;  %v59_v35 = vld [vmem:[#allocation6] sm:$0x3]  ;;  %vm295_vm3 = vcmask 7168  }
  0x39   :  { %323 = vmatpush3.bf16.msra.mxu0 %v351_v1  ;;  %331 = vmatpush3.bf16.msra.mxu1 %v353_v4 }
  0x3a   :  { %324 = vmatprep.subr.bf16.mxu0 %v442_v0  ;;  %332 = vmatprep.subr.bf16.mxu1 %v442_v0  ;;  %v147_v38 = vsub.s32 0, %v146_v34  ;;  %v152_v42 = vsub.s32 1, %v146_v34 }
  0x3d   :  { %325 = vmatpush3.bf16.msra.mxu0 %v352_v2  ;;  %333 = vmatpush3.bf16.msra.mxu1 %v354_v5 }
  0x3e   :  { %334 = vmatprep.subr.bf16.mxu1 %v442_v0 }
  0x40   :  { %327 = vmatmul.mubr.msk.bf16.vlgmr.msra.gmra.mrb[0].mxu0 %vm72_vm1, %v54_v3 }
  0x41   :  { %335 = vmatpush3.bf16.msra.mxu1 %v355_v6 }
  0x42   :  { %336 = vmatprep.subr.bf16.mxu1 %v442_v0 }
  0x45   :  { %337 = vmatpush3.bf16.msra.mxu1 %v356_v7 }
 0x113   :  { %v110_v8 = vpop.f32.mrb[0].mxu0 }
 0x114   :  { %v117_v9 = vsel %vm116_vm2, %v110_v8, 0.0  ;;  %v124_v10 = vmul.f32 %v110_v8, %v110_v8  ;;  %v328_v11 = vpop.f32.mrb[1].mxu0 }
 0x115   :  { %v118_v12 = vrot.slane %v117_v9, 4  ;;  %v113_v13 = vpop.f32.mrb[2].mxu0  ;;  %v166_v11 = vld [vmem:[#allocation6 + $0x8] sm:$0x3] }
 0x116   :  { %v125_v14 = vsel %vm116_vm2, %v124_v10, 0.0  ;;  %v329_v15 = vpop.f32.mrb[3].mxu0 }
 0x117   :  { %v119_v16 = vadd.f32 %v118_v12, %v117_v9  ;;  %v126_v17 = vrot.slane %v125_v14, 4 }
 0x119   :  { %v120_v18 = vrot.slane %v119_v16, 2  ;;  %v127_v19 = vadd.f32 %v126_v17, %v125_v14 }
 0x11b   :  { %v121_v20 = vadd.f32 %v120_v18, %v119_v16  ;;  %v128_v21 = vrot.slane %v127_v19, 2 }
 0x11d   :  { %v122_v22 = vrot.slane %v121_v20, 1  ;;  %v129_v23 = vadd.f32 %v128_v21, %v127_v19 }
 0x11f   :  { %v123_v24 = vadd.f32 %v122_v22, %v121_v20  ;;  %v130_v25 = vrot.slane %v129_v23, 1  ;;  %v311_v22 = vld [vmem:[#allocation6 + $0x10] ss:$0 sm:$0xff] }
 0x121   :  { %v131_v26 = vadd.f32 %v130_v25, %v129_v23  ;;  %v132_v27 = vmul.f32 0.125, %v123_v24 }
 0x123   :  { %v133_v28 = vmul.f32 0.125, %v131_v26  ;;  %v134_v29 = vmul.f32 %v132_v27, %v132_v27  ;;  %v312_v26 = vld [vmem:[#allocation6 + $0x11] ss:$0 sm:$0xff] }
 0x125   :  { %v135_v30 = vsub.f32 %v133_v28, %v134_v29 }
 0x127   :  { %v136_v31 = vmax.f32 %v135_v30, 0.0 }
 0x129   :  { %v137_v32 = vadd.f32 1e-05, %v136_v31 }
 0x12b   :  { %357 = vrsqrt.f32 %v137_v32 }
 0x135   :  { %v358_v36 = vpop.eup %357 }
 0x136   :  { %v139_v37 = vmul.f32 %v358_v36, %v59_v35 }
 0x138   :  { %v140_v39 = vmul.f32 %v139_v37, %v132_v27  ;;  %v148_v41 = vrot.slane %v139_v37, %v147_v38 }
 0x13a   :  { %v142_v40 = vrot.slane %v140_v39, 7  ;;  %v149_v44 = vmul.f32 %v148_v41, %v110_v8 }
 0x13c   :  { %v144_v43 = vsub.f32 %v59_v35, %v142_v40 }
 0x13e   :  { %v153_v45 = vrot.slane %v144_v43, %v152_v42 }
 0x140   :  { %v154_v46 = vadd.f32 %v153_v45, %v149_v44 }
 0x142   :  { %v155_v47 = vmul.f32 0.2, %v154_v46 }
 0x144   :  { %v156_v48 = vmax.f32 %v154_v46, %v155_v47 }
 0x146   :  { %v157_v49 = vpack.c.bf16 %v156_v48, %v156_v48 }
 0x148   :  { %339 = vmatmul.mubr.msk.bf16.vlgmr.msra.gmra.mrb[0].mxu1 %vm116_vm2, %v157_v49 }
 0x21b   :  { %v228_v50 = vpop.f32.mrb[0].mxu1 }
 0x21c   :  { %v234_v51 = vsel %vm72_vm1, %v228_v50, 0.0  ;;  %v241_v52 = vmul.f32 %v228_v50, %v228_v50  ;;  %v340_v53 = vpop.f32.mrb[1].mxu1 }
 0x21d   :  { %v235_v54 = vrot.slane %v234_v51, 4  ;;  %v231_v55 = vpop.f32.mrb[2].mxu1 }
 0x21e   :  { %v242_v56 = vsel %vm72_vm1, %v241_v52, 0.0  ;;  %v341_v57 = vpop.f32.mrb[3].mxu1 }
 0x21f   :  { %v236_v58 = vadd.f32 %v235_v54, %v234_v51  ;;  %v243_v59 = vrot.slane %v242_v56, 4 }
 0x221   :  { %v237_v60 = vrot.slane %v236_v58, 2  ;;  %v244_v61 = vadd.f32 %v243_v59, %v242_v56 }
 0x223   :  { %v238_v62 = vadd.f32 %v237_v60, %v236_v58  ;;  %v245_v63 = vrot.slane %v244_v61, 2 }
 0x225   :  { %v239_v0 = vrot.slane %v238_v62, 1  ;;  %v246_v1 = vadd.f32 %v245_v63, %v244_v61 }
 0x227   :  { %v240_v2 = vadd.f32 %v239_v0, %v238_v62  ;;  %v247_v3 = vrot.slane %v246_v1, 1 }
 0x229   :  { %v248_v4 = vadd.f32 %v247_v3, %v246_v1  ;;  %v249_v5 = vmul.f32 0.125, %v240_v2 }
 0x22b   :  { %v250_v6 = vmul.f32 0.125, %v248_v4  ;;  %v251_v7 = vmul.f32 %v249_v5, %v249_v5 }
 0x22d   :  { %v252_v8 = vsub.f32 %v250_v6, %v251_v7 }
 0x22f   :  { %v253_v9 = vmax.f32 %v252_v8, 0.0 }
 0x231   :  { %v254_v10 = vadd.f32 1e-05, %v253_v9 }
 0x233   :  { %359 = vrsqrt.f32 %v254_v10 }
 0x23d   :  { %v360_v12 = vpop.eup %359 }
 0x23e   :  { %v256_v13 = vmul.f32 %v360_v12, %v166_v11 }
 0x240   :  { %v257_v14 = vmul.f32 %v256_v13, %v249_v5  ;;  %v265_v16 = vrot.slane %v256_v13, %v147_v38 }
 0x242   :  { %v259_v15 = vrot.slane %v257_v14, 7  ;;  %v266_v18 = vmul.f32 %v265_v16, %v228_v50 }
 0x244   :  { %v261_v17 = vsub.f32 %v166_v11, %v259_v15 }
 0x246   :  { %v270_v19 = vrot.slane %v261_v17, %v152_v42 }
 0x248   :  { %v271_v20 = vadd.f32 %v270_v19, %v266_v18 }
 0x24a   :  { %v272_v21 = vmul.f32 0.2, %v271_v20 }
 0x24c   :  { %v273_v23 = vmax.f32 %v271_v20, %v272_v21 }
 0x24e   :  { %v280_v24 = vmul.f32 %v311_v22, %v273_v23 }
 0x250   :  { %v281_v25 = vsel %vm72_vm1, %v280_v24, 0.0 }
 0x251   :  { %282 = vadd.xlane.f32.xlu0 %v281_v25 }
 0x2de   :  { %v283_v27 = vpop.xlane.xlu0 %282 }
 0x2df   :  { %v288_v28 = vadd.f32 %v312_v26, %v283_v27 }
 0x2e1   :  { %v313_v29 = vmul.f32 -1.442695, %v288_v28 }
 0x2e3   :  { %361 = vpow2.f32 %v313_v29 }
 0x2ed   :  { %v362_v30 = vpop.eup %361 }
 0x2ee   :  { %v292_v31 = vadd.f32 1.0, %v362_v30 }
 0x2f0   :  { %363 = vrcp.f32 %v292_v31 }
 0x2fa   :  { %v364_v32 = vpop.eup %363 }
 0x2fb   :  { %296 = vst.msk [vmem:[%s513_s3] sm:$0xff] %vm295_vm3, %v364_v32 }
 0x2fc   :  { %301 = vsyncpa [#allocation3], 1 }
 0x2fd   :  { %302 = vsyncpa [#allocation5], 1 }

</bundles_post_ra>
